<compile_context>
chip_gen: v6e
topology: v6e:2x2x1
jax: 0.10.0
libtpu: 0.0.40
codegen_flags: <defaults>
</compile_context>

<pallas_src>
import functools
from math import log, pi

import jax
import jax.numpy as jnp
from jax.experimental import pallas as pl
from jax.experimental.pallas import tpu as pltpu

NEG_SLOPE = 0.01  # F.leaky_relu default negative_slope


def _leaky_relu(x):
    return jnp.where(x >= 0, x, NEG_SLOPE * x)


def realnvp_kernel(
    h0_ref, h1_ref,                      # (half, tile_n) each: the two halves, batch on lanes
    w1_ref, b1_ref, w2_ref, b2_ref,      # fused s/t weights (resident every step)
    out_ref,                             # (1, tile_n) lane-dense log-prob slab
    *, n_affine, half, log_gauss_norm,
):
    h0 = h0_ref[...].astype(jnp.float32)   # phi[:, :half]   transposed -> (half, tile_n)
    h1 = h1_ref[...].astype(jnp.float32)   # phi[:, half:]   transposed -> (half, tile_n)

    log_jac = jnp.zeros((1, h0.shape[1]), jnp.float32)

    for i in range(n_affine):  # n_affine is static -> unrolled at trace time
        if i % 2 == 0:
            a, b = h0, h1
        else:
            a, b = h1, h0

        # Fused s/t layer 1: (2*hidden, half) @ (half, tile_n) -> (2*hidden, tile_n)
        h_cat = _leaky_relu(
            jnp.dot(w1_ref[i], a, preferred_element_type=jnp.float32) + b1_ref[i]
        )
        # Fused (block-diagonal) s/t layer 2:
        # (2*half, 2*hidden) @ (2*hidden, tile_n) -> (2*half, tile_n)
        o_cat = _leaky_relu(
            jnp.dot(w2_ref[i], h_cat, preferred_element_type=jnp.float32) + b2_ref[i]
        )
        s_o = o_cat[:half, :]   # sublane-boundary split (half = 8) -> free for f32
        t_o = o_cat[half:, :]

        # log det jacobian contribution: sum_j s(phi_a)_j  (a-half unchanged -> exact)
        log_jac = log_jac + jnp.sum(s_o, axis=0, keepdims=True)

        # affine coupling: z_b = exp(s) * phi_b + t
        z_b = jnp.exp(s_o) * b + t_o
        if i % 2 == 0:
            h1 = z_b
        else:
            h0 = z_b

    # standard-normal log probability of the mapped state
    sq = jnp.sum(h0 * h0 + h1 * h1, axis=0, keepdims=True)     # (1, tile_n)
    log_simple = -0.5 * sq - log_gauss_norm
    out_ref[...] = (log_simple + log_jac).astype(out_ref.dtype)


def realnvp_forward(x, params, *, n_affine, size_in, hidden, tile_n=256):
    """x: (N, size_in) float32 -> (N, 1) log model probability.

    tile_n: batch tile (multiple of 128). Sweep per chip generation; at these
    feature sizes VMEM is never binding (v7x's 64 MiB included).
    """
    N, D = x.shape
    assert D == size_in
    assert tile_n % 128 == 0
    half = size_in // 2
    log_gauss_norm = 0.5 * size_in * log(2.0 * pi)

    # --- wrapper-side exact fusion of the s/t networks (torch layout: (out, in)) ---
    # Layer 1: stack s and t outputs -> one matmul with a 2*hidden-tall LHS.
    w1_cat = jnp.concatenate([params["s_w1"], params["t_w1"]], axis=1)             # (L, 2H, half)
    b1_cat = jnp.concatenate([params["s_b1"], params["t_b1"]], axis=1)[..., None]  # (L, 2H, 1)
    # Layer 2: block-diagonal weight so s only sees s-hidden and t only t-hidden.
    zeros_w2 = jnp.zeros_like(params["s_w2"])                                      # (L, half, H)
    w2_blk = jnp.concatenate(
        [jnp.concatenate([params["s_w2"], zeros_w2], axis=2),
         jnp.concatenate([zeros_w2, params["t_w2"]], axis=2)],
        axis=1,
    )                                                                              # (L, 2*half, 2H)
    b2_cat = jnp.concatenate([params["s_b2"], params["t_b2"]], axis=1)[..., None]  # (L, 2*half, 1)

    # --- batch-on-lanes: transpose, pre-split halves, pad batch to the tile ---
    n_pad = -N % tile_n
    xt = jnp.pad(x.T, ((0, 0), (0, n_pad)))          # (D, N_pad)
    h0 = xt[:half, :]
    h1 = xt[half:, :]
    n_total = N + n_pad

    param_list = [w1_cat, b1_cat, w2_blk, b2_cat]

    in_specs = [
        pl.BlockSpec((half, tile_n), lambda i: (0, i)),
        pl.BlockSpec((half, tile_n), lambda i: (0, i)),
    ]
    for p in param_list:
        # Whole (tiny) parameter tensor resident every grid step (same block index).
        in_specs.append(pl.BlockSpec(p.shape, lambda i: (0, 0, 0)))

    cost = pl.CostEstimate(
        flops=int(12 * n_total * n_affine * hidden * half),
        transcendentals=int(n_total * n_affine * half),
        bytes_accessed=int(4 * (n_total * (D + 1) + sum(p.size for p in param_list))),
    )

    kernel = functools.partial(
        realnvp_kernel,
        n_affine=n_affine,
        half=half,
        log_gauss_norm=log_gauss_norm,
    )

    out = pl.pallas_call(
        kernel,
        out_shape=jax.ShapeDtypeStruct((1, n_total), jnp.float32),
        grid=(n_total // tile_n,),
        in_specs=in_specs,
        out_specs=pl.BlockSpec((1, tile_n), lambda i: (0, i)),
        compiler_params=pltpu.CompilerParams(
            dimension_semantics=("parallel",)
        ),
        cost_estimate=cost,
    )(h0, h1, *param_list)

    # lane-dense (1, N_pad) slab -> (N, 1) column, matching the PyTorch module.
    return out[0, :N][:, None]


def make_params(key, *, n_affine, size_in, hidden):
    """Deterministic nn.Linear-style init: U(-1/sqrt(fan_in), 1/sqrt(fan_in)).
    Weights stored in torch layout (out, in); biases (out,)."""
    half = size_in // 2
    ks = jax.random.split(key, 8)

    def u(k, shape, fan_in):
        bound = 1.0 / jnp.sqrt(jnp.float32(fan_in))
        return jax.random.uniform(k, shape, jnp.float32, -bound, bound)

    return {
        "s_w1": u(ks[0], (n_affine, hidden, half), half),
        "s_b1": u(ks[1], (n_affine, hidden), half),
        "s_w2": u(ks[2], (n_affine, half, hidden), hidden),
        "s_b2": u(ks[3], (n_affine, half), hidden),
        "t_w1": u(ks[4], (n_affine, hidden, half), half),
        "t_b1": u(ks[5], (n_affine, hidden), half),
        "t_w2": u(ks[6], (n_affine, half, hidden), hidden),
        "t_b2": u(ks[7], (n_affine, half), hidden),
    }


def realnvp_reference(x, params, *, n_affine, size_in):
    """Pure-JAX reference mirroring the PyTorch forward exactly (unfused weights)."""
    half = size_in // 2
    log_gauss_norm = 0.5 * size_in * log(2.0 * pi)
    z = x
    log_jac = jnp.zeros((x.shape[0], 1), jnp.float32)
    for i in range(n_affine):
        if i % 2 == 0:
            a, b = z[:, :half], z[:, half:]
        else:
            a, b = z[:, half:], z[:, :half]
        s_h = _leaky_relu(a @ params["s_w1"][i].T + params["s_b1"][i])
        s_o = _leaky_relu(s_h @ params["s_w2"][i].T + params["s_b2"][i])
        t_h = _leaky_relu(a @ params["t_w1"][i].T + params["t_b1"][i])
        t_o = _leaky_relu(t_h @ params["t_w2"][i].T + params["t_b2"][i])
        log_jac = log_jac + jnp.sum(s_o, axis=-1, keepdims=True)
        z_b = jnp.exp(s_o) * b + t_o
        if i % 2 == 0:
            z = jnp.concatenate([a, z_b], axis=1)
        else:
            z = jnp.concatenate([z_b, a], axis=1)
    log_simple = -jnp.sum(z * z / 2.0, axis=-1, keepdims=True) - log_gauss_norm
    return log_simple + log_jac


if __name__ == "__main__":
    N_STATES = 512    # batch of field configurations (2 grid steps of 256)
    SIZE_IN = 16      # lattice sites per state (D)
    HIDDEN = 16       # affine_hidden_shape = (16,)
    N_AFFINE = 2
    TILE_N = 256      # batch tile (lanes); tune per chip generation

    key = jax.random.PRNGKey(0)
    k_x, k_p = jax.random.split(key)
    x = jax.random.normal(k_x, (N_STATES, SIZE_IN), jnp.float32)
    params = make_params(k_p, n_affine=N_AFFINE, size_in=SIZE_IN, hidden=HIDDEN)

    out = realnvp_forward(
        x, params, n_affine=N_AFFINE, size_in=SIZE_IN, hidden=HIDDEN, tile_n=TILE_N
    )
    out = jax.block_until_ready(out)

    ref = realnvp_reference(x, params, n_affine=N_AFFINE, size_in=SIZE_IN)
    assert out.shape == (N_STATES, 1)
    assert jnp.allclose(out, ref, atol=1e-4, rtol=1e-4), (out[:4], ref[:4])

    print("KERNEL_OK")
</pallas_src>

<mosaic_0001>
module attributes {stable_mosaic.version = 11 : i64} {
  func.func @realnvp_kernel(%arg0: i32, %arg1: memref<8x256xf32, #tpu.memory_space<vmem>>, %arg2: memref<8x256xf32, #tpu.memory_space<vmem>>, %arg3: memref<2x32x8xf32, #tpu.memory_space<vmem>>, %arg4: memref<2x32x1xf32, #tpu.memory_space<vmem>>, %arg5: memref<2x16x32xf32, #tpu.memory_space<vmem>>, %arg6: memref<2x16x1xf32, #tpu.memory_space<vmem>>, %arg7: memref<1x256xf32, #tpu.memory_space<vmem>>) attributes {dimension_semantics = [#tpu.dimension_semantics<parallel>], iteration_bounds = array<i64: 2>, scalar_prefetch = 0 : i64, scratch_operands = 0 : i64, tpu.core_type = #tpu.core_type<tc>, window_params = [{transform_indices = @transform_0, window_bounds = array<i64: 8, 256>}, {transform_indices = @transform_1, window_bounds = array<i64: 8, 256>}, {pipeline_mode = #tpu.pipeline_mode<synchronous>, transform_indices = @transform_2, window_bounds = array<i64: 2, 32, 8>}, {pipeline_mode = #tpu.pipeline_mode<synchronous>, transform_indices = @transform_3, window_bounds = array<i64: 2, 32, 1>}, {pipeline_mode = #tpu.pipeline_mode<synchronous>, transform_indices = @transform_4, window_bounds = array<i64: 2, 16, 32>}, {pipeline_mode = #tpu.pipeline_mode<synchronous>, transform_indices = @transform_5, window_bounds = array<i64: 2, 16, 1>}, {transform_indices = @transform_6, window_bounds = array<i64: 1, 256>}]} {
    %c0 = arith.constant 0 : index
    %c0_0 = arith.constant 0 : index
    %0 = vector.load %arg1[%c0, %c0_0] : memref<8x256xf32, #tpu.memory_space<vmem>>, vector<8x256xf32>
    %c0_1 = arith.constant 0 : index
    %c0_2 = arith.constant 0 : index
    %1 = vector.load %arg2[%c0_1, %c0_2] : memref<8x256xf32, #tpu.memory_space<vmem>>, vector<8x256xf32>
    %cst = arith.constant 0.000000e+00 : f32
    %2 = vector.broadcast %cst : f32 to vector<1x256xf32>
    %c0_3 = arith.constant 0 : index
    %c0_4 = arith.constant 0 : index
    %c0_5 = arith.constant 0 : index
    %3 = vector.load %arg3[%c0_3, %c0_4, %c0_5] : memref<2x32x8xf32, #tpu.memory_space<vmem>>, vector<1x32x8xf32>
    %4 = vector.shape_cast %3 : vector<1x32x8xf32> to vector<32x8xf32>
    %cst_6 = arith.constant dense<0.000000e+00> : vector<32x256xf32>
    %5 = tpu.matmul %4, %0, %cst_6 {dimension_numbers = #tpu.dot_dimension_numbers<[1], [0], [0], [1], [0, 0, 1, 1], [], []>} : vector<32x8xf32>, vector<8x256xf32>, vector<32x256xf32> -> vector<32x256xf32>
    %c0_7 = arith.constant 0 : index
    %c0_8 = arith.constant 0 : index
    %c0_9 = arith.constant 0 : index
    %6 = vector.load %arg4[%c0_7, %c0_8, %c0_9] : memref<2x32x1xf32, #tpu.memory_space<vmem>>, vector<1x32x1xf32>
    %7 = vector.shape_cast %6 : vector<1x32x1xf32> to vector<32x1xf32>
    %8 = vector.broadcast %7 : vector<32x1xf32> to vector<32x256xf32>
    %9 = arith.addf %5, %8 : vector<32x256xf32>
    %cst_10 = arith.constant 0.000000e+00 : f32
    %10 = vector.broadcast %cst_10 : f32 to vector<32x256xf32>
    %11 = arith.cmpf oge, %9, %10 : vector<32x256xf32>
    %cst_11 = arith.constant 0.00999999977 : f32
    %12 = vector.broadcast %cst_11 : f32 to vector<32x256xf32>
    %13 = arith.mulf %12, %9 : vector<32x256xf32>
    %14 = arith.select %11, %9, %13 : vector<32x256xi1>, vector<32x256xf32>
    %c0_12 = arith.constant 0 : index
    %c0_13 = arith.constant 0 : index
    %c0_14 = arith.constant 0 : index
    %15 = vector.load %arg5[%c0_12, %c0_13, %c0_14] : memref<2x16x32xf32, #tpu.memory_space<vmem>>, vector<1x16x32xf32>
    %16 = vector.shape_cast %15 : vector<1x16x32xf32> to vector<16x32xf32>
    %cst_15 = arith.constant dense<0.000000e+00> : vector<16x256xf32>
    %17 = tpu.matmul %16, %14, %cst_15 {dimension_numbers = #tpu.dot_dimension_numbers<[1], [0], [0], [1], [0, 0, 1, 1], [], []>} : vector<16x32xf32>, vector<32x256xf32>, vector<16x256xf32> -> vector<16x256xf32>
    %c0_16 = arith.constant 0 : index
    %c0_17 = arith.constant 0 : index
    %c0_18 = arith.constant 0 : index
    %18 = vector.load %arg6[%c0_16, %c0_17, %c0_18] : memref<2x16x1xf32, #tpu.memory_space<vmem>>, vector<1x16x1xf32>
    %19 = vector.shape_cast %18 : vector<1x16x1xf32> to vector<16x1xf32>
    %20 = vector.broadcast %19 : vector<16x1xf32> to vector<16x256xf32>
    %21 = arith.addf %17, %20 : vector<16x256xf32>
    %cst_19 = arith.constant 0.000000e+00 : f32
    %22 = vector.broadcast %cst_19 : f32 to vector<16x256xf32>
    %23 = arith.cmpf oge, %21, %22 : vector<16x256xf32>
    %cst_20 = arith.constant 0.00999999977 : f32
    %24 = vector.broadcast %cst_20 : f32 to vector<16x256xf32>
    %25 = arith.mulf %24, %21 : vector<16x256xf32>
    %26 = arith.select %23, %21, %25 : vector<16x256xi1>, vector<16x256xf32>
    %27 = vector.extract_strided_slice %26 {offsets = [0, 0], sizes = [8, 256], strides = [1, 1]} : vector<16x256xf32> to vector<8x256xf32>
    %28 = vector.extract_strided_slice %26 {offsets = [8, 0], sizes = [8, 256], strides = [1, 1]} : vector<16x256xf32> to vector<8x256xf32>
    %cst_21 = arith.constant dense<0.000000e+00> : vector<256xf32>
    %29 = vector.multi_reduction <add>, %27, %cst_21 [0] : vector<8x256xf32> to vector<256xf32>
    %30 = vector.shape_cast %29 : vector<256xf32> to vector<1x256xf32>
    %31 = arith.addf %2, %30 : vector<1x256xf32>
    %32 = math.exp %27 : vector<8x256xf32>
    %33 = arith.mulf %32, %1 : vector<8x256xf32>
    %34 = arith.addf %33, %28 : vector<8x256xf32>
    %c1 = arith.constant 1 : index
    %c0_22 = arith.constant 0 : index
    %c0_23 = arith.constant 0 : index
    %35 = vector.load %arg3[%c1, %c0_22, %c0_23] : memref<2x32x8xf32, #tpu.memory_space<vmem>>, vector<1x32x8xf32>
    %36 = vector.shape_cast %35 : vector<1x32x8xf32> to vector<32x8xf32>
    %cst_24 = arith.constant dense<0.000000e+00> : vector<32x256xf32>
    %37 = tpu.matmul %36, %34, %cst_24 {dimension_numbers = #tpu.dot_dimension_numbers<[1], [0], [0], [1], [0, 0, 1, 1], [], []>} : vector<32x8xf32>, vector<8x256xf32>, vector<32x256xf32> -> vector<32x256xf32>
    %c1_25 = arith.constant 1 : index
    %c0_26 = arith.constant 0 : index
    %c0_27 = arith.constant 0 : index
    %38 = vector.load %arg4[%c1_25, %c0_26, %c0_27] : memref<2x32x1xf32, #tpu.memory_space<vmem>>, vector<1x32x1xf32>
    %39 = vector.shape_cast %38 : vector<1x32x1xf32> to vector<32x1xf32>
    %40 = vector.broadcast %39 : vector<32x1xf32> to vector<32x256xf32>
    %41 = arith.addf %37, %40 : vector<32x256xf32>
    %cst_28 = arith.constant 0.000000e+00 : f32
    %42 = vector.broadcast %cst_28 : f32 to vector<32x256xf32>
    %43 = arith.cmpf oge, %41, %42 : vector<32x256xf32>
    %cst_29 = arith.constant 0.00999999977 : f32
    %44 = vector.broadcast %cst_29 : f32 to vector<32x256xf32>
    %45 = arith.mulf %44, %41 : vector<32x256xf32>
    %46 = arith.select %43, %41, %45 : vector<32x256xi1>, vector<32x256xf32>
    %c1_30 = arith.constant 1 : index
    %c0_31 = arith.constant 0 : index
    %c0_32 = arith.constant 0 : index
    %47 = vector.load %arg5[%c1_30, %c0_31, %c0_32] : memref<2x16x32xf32, #tpu.memory_space<vmem>>, vector<1x16x32xf32>
    %48 = vector.shape_cast %47 : vector<1x16x32xf32> to vector<16x32xf32>
    %cst_33 = arith.constant dense<0.000000e+00> : vector<16x256xf32>
    %49 = tpu.matmul %48, %46, %cst_33 {dimension_numbers = #tpu.dot_dimension_numbers<[1], [0], [0], [1], [0, 0, 1, 1], [], []>} : vector<16x32xf32>, vector<32x256xf32>, vector<16x256xf32> -> vector<16x256xf32>
    %c1_34 = arith.constant 1 : index
    %c0_35 = arith.constant 0 : index
    %c0_36 = arith.constant 0 : index
    %50 = vector.load %arg6[%c1_34, %c0_35, %c0_36] : memref<2x16x1xf32, #tpu.memory_space<vmem>>, vector<1x16x1xf32>
    %51 = vector.shape_cast %50 : vector<1x16x1xf32> to vector<16x1xf32>
    %52 = vector.broadcast %51 : vector<16x1xf32> to vector<16x256xf32>
    %53 = arith.addf %49, %52 : vector<16x256xf32>
    %cst_37 = arith.constant 0.000000e+00 : f32
    %54 = vector.broadcast %cst_37 : f32 to vector<16x256xf32>
    %55 = arith.cmpf oge, %53, %54 : vector<16x256xf32>
    %cst_38 = arith.constant 0.00999999977 : f32
    %56 = vector.broadcast %cst_38 : f32 to vector<16x256xf32>
    %57 = arith.mulf %56, %53 : vector<16x256xf32>
    %58 = arith.select %55, %53, %57 : vector<16x256xi1>, vector<16x256xf32>
    %59 = vector.extract_strided_slice %58 {offsets = [0, 0], sizes = [8, 256], strides = [1, 1]} : vector<16x256xf32> to vector<8x256xf32>
    %60 = vector.extract_strided_slice %58 {offsets = [8, 0], sizes = [8, 256], strides = [1, 1]} : vector<16x256xf32> to vector<8x256xf32>
    %cst_39 = arith.constant dense<0.000000e+00> : vector<256xf32>
    %61 = vector.multi_reduction <add>, %59, %cst_39 [0] : vector<8x256xf32> to vector<256xf32>
    %62 = vector.shape_cast %61 : vector<256xf32> to vector<1x256xf32>
    %63 = arith.addf %31, %62 : vector<1x256xf32>
    %64 = math.exp %59 : vector<8x256xf32>
    %65 = arith.mulf %64, %0 : vector<8x256xf32>
    %66 = arith.addf %65, %60 : vector<8x256xf32>
    %67 = arith.mulf %66, %66 : vector<8x256xf32>
    %68 = arith.mulf %34, %34 : vector<8x256xf32>
    %69 = arith.addf %67, %68 : vector<8x256xf32>
    %cst_40 = arith.constant dense<0.000000e+00> : vector<256xf32>
    %70 = vector.multi_reduction <add>, %69, %cst_40 [0] : vector<8x256xf32> to vector<256xf32>
    %71 = vector.shape_cast %70 : vector<256xf32> to vector<1x256xf32>
    %cst_41 = arith.constant -5.000000e-01 : f32
    %72 = vector.broadcast %cst_41 : f32 to vector<1x256xf32>
    %73 = arith.mulf %72, %71 : vector<1x256xf32>
    %cst_42 = arith.constant 14.7030163 : f32
    %74 = vector.broadcast %cst_42 : f32 to vector<1x256xf32>
    %75 = arith.subf %73, %74 : vector<1x256xf32>
    %76 = arith.addf %75, %63 : vector<1x256xf32>
    %c0_43 = arith.constant 0 : index
    %c0_44 = arith.constant 0 : index
    %77 = vector.load %arg7[%c0_43, %c0_44] : memref<1x256xf32, #tpu.memory_space<vmem>>, vector<1x256xf32>
    tpu.vector_store %arg7[%c0_43, %c0_44], %76 {strides = array<i32>} : memref<1x256xf32, #tpu.memory_space<vmem>>, vector<1x256xf32>,
    return
  }
  func.func @transform_0(%arg0: i32) -> (i32, i32) {
    %c0_i32 = arith.constant 0 : i32
    %c0_i32_0 = arith.constant 0 : i32
    return %c0_i32, %arg0 : i32, i32
  }
  func.func @transform_1(%arg0: i32) -> (i32, i32) {
    %c0_i32 = arith.constant 0 : i32
    %c0_i32_0 = arith.constant 0 : i32
    return %c0_i32, %arg0 : i32, i32
  }
  func.func @transform_2(%arg0: i32) -> (i32, i32, i32) {
    %c0_i32 = arith.constant 0 : i32
    %c0_i32_0 = arith.constant 0 : i32
    %c0_i32_1 = arith.constant 0 : i32
    %c0_i32_2 = arith.constant 0 : i32
    return %c0_i32, %c0_i32_0, %c0_i32_1 : i32, i32, i32
  }
  func.func @transform_3(%arg0: i32) -> (i32, i32, i32) {
    %c0_i32 = arith.constant 0 : i32
    %c0_i32_0 = arith.constant 0 : i32
    %c0_i32_1 = arith.constant 0 : i32
    %c0_i32_2 = arith.constant 0 : i32
    return %c0_i32, %c0_i32_0, %c0_i32_1 : i32, i32, i32
  }
  func.func @transform_4(%arg0: i32) -> (i32, i32, i32) {
    %c0_i32 = arith.constant 0 : i32
    %c0_i32_0 = arith.constant 0 : i32
    %c0_i32_1 = arith.constant 0 : i32
    %c0_i32_2 = arith.constant 0 : i32
    return %c0_i32, %c0_i32_0, %c0_i32_1 : i32, i32, i32
  }
  func.func @transform_5(%arg0: i32) -> (i32, i32, i32) {
    %c0_i32 = arith.constant 0 : i32
    %c0_i32_0 = arith.constant 0 : i32
    %c0_i32_1 = arith.constant 0 : i32
    %c0_i32_2 = arith.constant 0 : i32
    return %c0_i32, %c0_i32_0, %c0_i32_1 : i32, i32, i32
  }
  func.func @transform_6(%arg0: i32) -> (i32, i32) {
    %c0_i32 = arith.constant 0 : i32
    %c0_i32_0 = arith.constant 0 : i32
    return %c0_i32, %arg0 : i32, i32
  }
}

</mosaic_0001>

<bundles_post_ra>
// kernel: tpu_custom_call.1
= control target key start
LH: loop header
LB: loop body
LE: loop exit
PB: predicated region body
PF: predicated region fallthrough
CT: control target
= control target key end

     0   :  { %11 = vsyncpa [#allocation3], 0  ;;  %s1400_s0 = inlined_call_operand.vmem [shape: f32[8,512], index: 0, kind: input, shape index: {}]   ;;  %s1401_s1 = inlined_call_operand.vmem [shape: f32[8,512], index: 1, kind: input, shape index: {}]   ;;  %s1402_s2 = inlined_call_operand.vmem [shape: f32[2,32,8], index: 2, kind: input, shape index: {}]   ;;  %s1403_s3 = inlined_call_operand.vmem [shape: f32[2,32,1], index: 3, kind: input, shape index: {}]   ;;  %s1404_s4 = inlined_call_operand.vmem [shape: f32[2,16,32], index: 4, kind: input, shape index: {}]   ;;  %s1405_s5 = inlined_call_operand.vmem [shape: f32[2,16,1], index: 5, kind: input, shape index: {}]   ;;  %s1406_s6 = inlined_call_operand.hbm [shape: f32[1,512], index: 6, kind: output, shape index: {}]  }
   0x1   :  { %13 = vsyncpa [#allocation3 + $0x1], 0  ;;  %s1180_s21 = smov 0   ;;  %s1182_s22 = smov 0  }
   0x2   :  { %s1184_s23 = smov 0   ;;  %s1186_s24 = smov 0  }
   0x3 LB: > { %s1201_s25 = sadd.s32 4294967295, %s1139_s24   ;;  %s986_s26 = sadd.s32 4294967294, %s1139_s24   ;;  %s1139_s24 = sphi %s1186_s24, %s1412_s24   ;;  %s1135_s23 = sphi %s1184_s23, %s1411_s23   ;;  %s1131_s22 = sphi %s1182_s22, %s1410_s22   ;;  %s1127_s21 = sphi %s1180_s21, %s1409_s21  }
   0x4   : > { %s1205_s27 = sadd.s32 1, %s1139_s24   ;;  %s162_s28 = sadd.s32 1, %s1135_s23 }
   0x5   : > { %s159_s29 = ssub.s32 %s1139_s24, %s1205_s27  ;;  %p172_p0 = scmp.ne.s32.totalorder %s1135_s23, %s1131_s22 }
   0x6   : > { %p160_p1 = scmp.eq.s32.totalorder %s159_s29, 0  ;;  %p173_p2 = scmp.eq.s32.totalorder %s1201_s25, 1 }
   0x7   : > { %p178_p3 = scmp.ne.s32.totalorder %s1131_s22, %s1127_s21  ;;  %p179_p4 = scmp.eq.s32.totalorder %s986_s26, 1 }
   0x8   : > { %s1216_s30 = scalar_select %p160_p1, %s1135_s23, %s162_s28  }
   0x9   : > { %p1218_p5 = por %p173_p2, %p172_p0  ;;  %p1222_p6 = por %p179_p4, %p178_p3 }
   0xa   : > { %p989_p7 = scmp.ge.s32.totalorder %s1139_s24, 1  ;;  %p227_p8 = scmp.lt.s32.totalorder %s1139_s24, 3 }
   0xc   : > { %p228_p9 = pnand %p989_p7, %p227_p8 }
   0xd   : > { %s991_s9 = sshll.u32 (!%p228_p9), %s1201_s25, 1  ;;  %s259_s10 = sand.u32 (!%p228_p9), 1, %s1131_s22  }
   0xe   : > { %231 = sbr.rel (%p228_p9) target bundleno = 948 (0x3b4), region = 44  ;;  %p263_p10 = scmp.lt.s32.totalorder (!%p228_p9), %s991_s9, 3 }
   0xf   : > { %s990_s11 = sshll.u32 (!%p228_p9), %s259_s10, 1  ;;  %s901_s16 = scalar_lea.sflag (!%p228_p9), [#allocation3], %s259_s10 }
  0x10   : > { %s1144_s19 = smov (!%p228_p9), [#allocation2]  }
  0x11   : > { %s1083_s20 = sshll.u32 (!%p228_p9), %s1144_s19, 4  ;;  %s1084_s20 = int_to_ptr.vmem [resolvable:$false] %s1083_s20 }
  0x13   : > { %v1141_v0 = vmov 0.0   ;;  %v286_v1 = vld [vmem:[%s1403_s3 + $0x18] sm:$0xff]  ;;  %v1142_v2 = vmov 0   ;;  %v284_v3 = vld [vmem:[%s1403_s3 + $0x8] sm:$0xff]  ;;  %s1414_s9 = smov (!%p263_p10, %s991_s9), 3  ;;  %v285_v4 = vld [vmem:[%s1403_s3 + $0x10] sm:$0xff] }
  0x14   : > { %384 = vmatprep.mubr.f32.mxu0 %v1141_v0  ;;  %518 = vmatprep.mubr.f32.mxu1 %v1141_v0  ;;  %v283_v5 = vld [vmem:[%s1403_s3] sm:$0xff]  ;;  %s992_s18 = sshll.u32 %s1414_s9, 3  ;;  %vm307_vm0 = vcmask 64512   ;;  %v436_v10 = vld [vmem:[%s1405_s5 + $0x8] sm:$0xff]  ;;  %v1008_v12 = vld [vmem:[%s1403_s3 + $0x38] sm:$0xff]  ;;  %vm447_vm9 = vcmask 261120  }
  0x15   : > { %1069 = vset.pattern.permute.xlu0 %v1142_v2  ;;  %1070 = vset.pattern.permute.xlu1 %v1142_v2  ;;  %s266_s26 = scalar_lea.vmem %s1400_s0, %s992_s18  ;;  %v279_v7 = vld [vmem:[%s1402_s2] sm:$0xff]  ;;  %v280_v11 = vld [vmem:[%s1402_s2 + $0x8] sm:$0xff]  ;;  %v1007_v13 = vld [vmem:[%s1403_s3 + $0x30] sm:$0xff]  ;;  %s272_s12 = scalar_lea.vmem %s1401_s1, %s992_s18 }
  0x16   : > { %304 = vperm.xlu0 %1069, %v286_v1   ;;  %294 = vperm.xlu1 %1070, %v284_v3   ;;  %v1251_v6 = vld [vmem:[%s266_s26 + $0x8] sm:$0xff]  ;;  %v1257_v8 = vld [vmem:[%s266_s26] sm:$0xff]  ;;  %v281_v14 = vld [vmem:[%s1402_s2 + $0x10] sm:$0xff]  ;;  %s261_s9 = scalar_lea.vmem [#allocation2], %s990_s11 }
  0x17   : > { %350 = vmatprep.subr.mxu0 %v1251_v6  ;;  %v435_v9 = vld [vmem:[%s1405_s5] sm:$0xff]  ;;  %v1006_v15 = vld [vmem:[%s1403_s3 + $0x28] sm:$0xff]  ;;  %v282_v17 = vld [vmem:[%s1402_s2 + $0x18] sm:$0xff]  ;;  %s915_s18 = sshll.u32 %s261_s9, 4  ;;  %s916_s18 = int_to_ptr.vmem [resolvable:$true] %s915_s18 }
  0x18   : > { %351 = vmatpush1.msra.mxu0 %v1257_v8  ;;  %v1005_v16 = vld [vmem:[%s1403_s3 + $0x20] sm:$0xff]  ;;  %v1015_v18 = vld [vmem:[%s1405_s5 + $0x10] sm:$0xff]  ;;  %v1016_v19 = vld [vmem:[%s1405_s5 + $0x18] sm:$0xff]  ;;  %s1079_s17 = scalar_lea.vmem %s916_s18, 32  ;;  %p1086_p0 = scmp.lt.s32.totalorder %s916_s18, %s1084_s20 }
  0x19   : > { %995 = vmatmul.mubr.msk.f32.vlgmr.msra.gmra.mxu0 %vm307_vm0, %v279_v7  ;;  %v433_v55 = vld [vmem:[%s1404_s4] sm:$0xff]  ;;  %v434_v57 = vld [vmem:[%s1404_s4 + $0x8] sm:$0xff]  ;;  %p1080_p11 = scmp.ne.s32.totalorder %s916_s18, %s1079_s17 }
  0x1a   : > { %299 = vperm.xlu0 %1069, %v285_v4   ;;  %289 = vperm.xlu1 %1070, %v283_v5  }
  0x1b   : > { %390 = vmatprep.mubr.f32.mxu0 %v1141_v0  ;;  %p1081_p12 = pnand %p1080_p11, %p1218_p5 }
  0x1d   : > { %996 = vmatmul.mubr.msk.f32.gmra.mxu0 %vm307_vm0, %v280_v11  ;;  %p1082_p13 = pneg %p1081_p12 }
  0x1e   : > { %439 = vperm.xlu0 %1069, %v435_v9   ;;  %444 = vperm.xlu1 %1070, %v436_v10  }
  0x1f   : > { %396 = vmatprep.mubr.f32.mxu0 %v1141_v0 }
  0x21   : > { %997 = vmatmul.mubr.msk.f32.gmra.mxu0 %vm307_vm0, %v281_v14 }
  0x22   : > { %592 = vperm.xlu0 %1069, %v1008_v12   ;;  %587 = vperm.xlu1 %1070, %v1007_v13   ;;  %v277_v13 = vld [vmem:[%s272_s12] sm:$0xff] }
  0x23   : > { %402 = vmatprep.mubr.f32.mxu0 %v1141_v0 }
  0x25   : > { %998 = vmatmul.mubr.msk.f32.gmra.mxu0 %vm307_vm0, %v282_v17 }
  0x26   : > { %582 = vperm.xlu0 %1069, %v1006_v15   ;;  %577 = vperm.xlu1 %1070, %v1005_v16   ;;  %v278_v15 = vld [vmem:[%s272_s12 + $0x8] sm:$0xff]  ;;  %s1026_s12 = sshll.u32 %s1201_s25, 5  ;;  %s1085_s25 = scalar_lea.vmem %s1084_s20, 64 }
  0x27   : > { %806 = vmatprep.mubr.f32.mxu0 %v1141_v0  ;;  %s913_s15 = scalar_lea.hbm %s1406_s6, %s1026_s12  ;;  %p1087_p1 = scmp.lt.s32.totalorder %s1085_s25, %s1079_s17 }
  0x29   : > { %p1088_p2 = por %p1087_p1, %p1086_p0 }
  0x2a   : > { %728 = vperm.xlu0 %1069, %v1015_v18   ;;  %733 = vperm.xlu1 %1070, %v1016_v19  }
  0x2b   : > { %p1089_p3 = pnand %p1088_p2, %p1082_p13 }
  0x91   : > { %v305_v23 = vpop.permute.xlu0 %304  ;;  %v295_v26 = vpop.permute.xlu1 %294 }
  0x95   : > { %v300_v28 = vpop.permute.xlu0 %299  ;;  %v290_v34 = vpop.permute.xlu1 %289 }
  0x99   : > { %v440_v58 = vpop.permute.xlu0 %439  ;;  %v445_v10 = vpop.permute.xlu1 %444 }
  0xd9   : > { %v386_v20 = vpop.f32.mrf.mxu0 }
  0xda   : > { %v387_v42 = vadd.f32 %v386_v20, %v290_v34 }
  0xdb   : > { %v388_v21 = vpop.f32.mrf.mxu0 }
  0xdc   : > { %v389_v37 = vadd.f32 %v388_v21, %v290_v34  ;;  %v417_v50 = vmul.f32 0.01, %v387_v42  ;;  %vm409_vm8 = vcmp.ge.f32.partialorder %v387_v42, 0.0 }
  0xdd   : > { %v392_v22 = vpop.f32.mrf.mxu0 }
  0xde   : > { %v393_v38 = vadd.f32 %v392_v22, %v295_v26  ;;  %v418_v48 = vmul.f32 0.01, %v389_v37  ;;  %vm410_vm7 = vcmp.ge.f32.partialorder %v389_v37, 0.0  ;;  %v425_v56 = vsel %vm409_vm8, %v387_v42, %v417_v50 }
  0xdf   : > { %v394_v24 = vpop.f32.mrf.mxu0 }
  0xe0   : > { %v395_v35 = vadd.f32 %v394_v24, %v295_v26  ;;  %v419_v46 = vmul.f32 0.01, %v393_v38  ;;  %vm411_vm6 = vcmp.ge.f32.partialorder %v393_v38, 0.0  ;;  %v426_v54 = vsel %vm410_vm7, %v389_v37, %v418_v48  ;;  %v1002_v26 = vld [vmem:[%s1402_s2 + $0x28] sm:$0xff] }
  0xe1   : > { %v398_v25 = vpop.f32.mrf.mxu0 }
  0xe2   : > { %v399_v32 = vadd.f32 %v398_v25, %v300_v28  ;;  %v420_v44 = vmul.f32 0.01, %v395_v35  ;;  %vm412_vm5 = vcmp.ge.f32.partialorder %v395_v35, 0.0  ;;  %v427_v53 = vsel %vm411_vm6, %v393_v38, %v419_v46  ;;  %v1001_v25 = vld [vmem:[%s1402_s2 + $0x20] sm:$0xff] }
  0xe3   : > { %v400_v27 = vpop.f32.mrf.mxu0 }
  0xe4   : > { %v401_v30 = vadd.f32 %v400_v27, %v300_v28  ;;  %v421_v43 = vmul.f32 0.01, %v399_v32  ;;  %vm413_vm4 = vcmp.ge.f32.partialorder %v399_v32, 0.0  ;;  %v428_v52 = vsel %vm412_vm5, %v395_v35, %v420_v44  ;;  %v1003_v27 = vld [vmem:[%s1402_s2 + $0x30] sm:$0xff]  ;;  %v1004_v28 = vld [vmem:[%s1402_s2 + $0x38] sm:$0xff]  ;;  %v588_v35 = vpop.permute.xlu1 %587 }
  0xe5   : > { %v404_v29 = vpop.f32.mrf.mxu0 }
  0xe6   : > { %v405_v31 = vadd.f32 %v404_v29, %v305_v23  ;;  %v422_v40 = vmul.f32 0.01, %v401_v30  ;;  %vm414_vm3 = vcmp.ge.f32.partialorder %v401_v30, 0.0  ;;  %v429_v51 = vsel %vm413_vm4, %v399_v32, %v421_v43 }
  0xe7   : > { %v406_v33 = vpop.f32.mrf.mxu0 }
  0xe8   : > { %v407_v36 = vadd.f32 %v406_v33, %v305_v23  ;;  %v423_v39 = vmul.f32 0.01, %v405_v31  ;;  %vm415_vm2 = vcmp.ge.f32.partialorder %v405_v31, 0.0  ;;  %v430_v49 = vsel %vm414_vm3, %v401_v30, %v422_v40  ;;  %v593_v33 = vpop.permute.xlu0 %592  ;;  %v578_v43 = vpop.permute.xlu1 %577 }
  0xea   : > { %vm416_vm1 = vcmp.ge.f32.partialorder %v407_v36, 0.0  ;;  %v424_v41 = vmul.f32 0.01, %v407_v36  ;;  %v431_v47 = vsel %vm415_vm2, %v405_v31, %v423_v39 }
  0xec   : > { %v432_v45 = vsel %vm416_vm1, %v407_v36, %v424_v41  ;;  %v583_v40 = vpop.permute.xlu0 %582 }
  0xed   : > { %478 = vmatprep.subr.mxu1 %v432_v45 }
  0xee   : > { %479 = vmatpush1.msra.mxu1 %v431_v47 }
  0xef   : > { %480 = vmatprep.subr.mxu1 %v430_v49 }
  0xf0   : > { %481 = vmatpush1.msra.mxu1 %v429_v51 }
  0xf1   : > { %482 = vmatprep.subr.mxu1 %v428_v52 }
  0xf2   : > { %483 = vmatpush1.msra.mxu1 %v427_v53 }
  0xf3   : > { %484 = vmatprep.subr.mxu1 %v426_v54 }
  0xf4   : > { %485 = vmatpush1.msra.mxu1 %v425_v56 }
  0xf5   : > { %999 = vmatmul.mubr.msk.f32.vlgmr.msra.gmra.mxu1 %vm447_vm9, %v433_v55 }
  0xf6   : > { %524 = vmatprep.mubr.f32.mxu1 %v1141_v0 }
  0xf9   : > { %1000 = vmatmul.mubr.msk.f32.gmra.mxu1 %vm447_vm9, %v434_v57 }
  0xfa   : > { %671 = vmatprep.mubr.f32.mxu1 %v1141_v0 }
 0x1b5   : > { %v520_v59 = vpop.f32.mrf.mxu1 }
 0x1b6   : > { %v521_v60 = vadd.f32 %v520_v59, %v440_v58 }
 0x1b7   : > { %v522_v61 = vpop.f32.mrf.mxu1 }
 0x1b8   : > { %vm531_vm10 = vcmp.ge.f32.partialorder %v521_v60, 0.0  ;;  %v535_v62 = vmul.f32 0.01, %v521_v60  ;;  %v523_v63 = vadd.f32 %v522_v61, %v440_v58 }
 0x1b9   : > { %v526_v7 = vpop.f32.mrf.mxu1 }
 0x1ba   : > { %v1311_v1 = vsel %vm531_vm10, %v521_v60, %v535_v62  ;;  %vm532_vm11 = vcmp.ge.f32.partialorder %v523_v63, 0.0  ;;  %v536_v2 = vmul.f32 0.01, %v523_v63  ;;  %v527_v12 = vadd.f32 %v526_v7, %v445_v10  ;;  %v729_v7 = vpop.permute.xlu0 %728 }
 0x1bb   : > { %v557_v3 = vmul.f32 1.442695, %v1311_v1  ;;  %v528_v9 = vpop.f32.mrf.mxu1 }
 0x1bc   : > { %v1314_v4 = vsel %vm532_vm11, %v523_v63, %v536_v2  ;;  %v529_v11 = vadd.f32 %v528_v9, %v445_v10  ;;  %v537_v17 = vmul.f32 0.01, %v527_v12  ;;  %vm533_vm13 = vcmp.ge.f32.partialorder %v527_v12, 0.0  ;;  %v1013_v2 = vld [vmem:[%s1404_s4 + $0x10] sm:$0xff] }
 0x1bd   : > { %1071 = vpow2.f32 %v557_v3  ;;  %v559_v5 = vmul.f32 1.442695, %v1314_v4 }
 0x1be   : > { %v538_v16 = vmul.f32 0.01, %v529_v11  ;;  %vm534_vm12 = vcmp.ge.f32.partialorder %v529_v11, 0.0  ;;  %v541_v22 = vsel %vm533_vm13, %v527_v12, %v537_v17 }
 0x1bf   : > { %1073 = vpow2.f32 %v559_v5  ;;  %v1014_v5 = vld [vmem:[%s1404_s4 + $0x18] sm:$0xff] }
 0x1c0   : > { %v542_v21 = vsel %vm534_vm12, %v529_v11, %v538_v16 }
 0x1ca   : > { %v1072_v14 = vpop.eup %1071 }
 0x1cb   : > { %v561_v19 = vmul.f32 %v1072_v14, %v277_v13 }
 0x1cc   : > { %v1074_v18 = vpop.eup %1073 }
 0x1cd   : > { %v562_v20 = vmul.f32 %v1074_v18, %v278_v15  ;;  %v1324_v24 = vadd.f32 %v561_v19, %v541_v22  ;;  %v734_v19 = vpop.permute.xlu1 %733 }
 0x1cf   : > { %v1322_v23 = vadd.f32 %v562_v20, %v542_v21 }
 0x1d1   : > { %637 = vmatprep.subr.mxu1 %v1322_v23 }
 0x1d2   : > { %638 = vmatpush1.msra.mxu1 %v1324_v24 }
 0x1d3   : > { %1009 = vmatmul.mubr.msk.f32.vlgmr.msra.gmra.mxu1 %vm307_vm0, %v1001_v25 }
 0x1d4   : > { %677 = vmatprep.mubr.f32.mxu1 %v1141_v0 }
 0x1d7   : > { %1010 = vmatmul.mubr.msk.f32.gmra.mxu1 %vm307_vm0, %v1002_v26 }
 0x1d8   : > { %683 = vmatprep.mubr.f32.mxu1 %v1141_v0 }
 0x1db   : > { %1011 = vmatmul.mubr.msk.f32.gmra.mxu1 %vm307_vm0, %v1003_v27 }
 0x1dc   : > { %689 = vmatprep.mubr.f32.mxu1 %v1141_v0 }
 0x1df   : > { %1012 = vmatmul.mubr.msk.f32.gmra.mxu1 %vm307_vm0, %v1004_v28  ;;  %v543_v28 = vrot.slane %v1311_v1, 4 }
 0x293   : > { %v673_v29 = vpop.f32.mrf.mxu1 }
 0x294   : > { %v674_v51 = vadd.f32 %v673_v29, %v578_v43 }
 0x295   : > { %v675_v30 = vpop.f32.mrf.mxu1 }
 0x296   : > { %v676_v46 = vadd.f32 %v675_v30, %v578_v43  ;;  %v704_v59 = vmul.f32 0.01, %v674_v51  ;;  %vm696_vm5 = vcmp.ge.f32.partialorder %v674_v51, 0.0 }
 0x297   : > { %v679_v31 = vpop.f32.mrf.mxu1 }
 0x298   : > { %v680_v47 = vadd.f32 %v679_v31, %v583_v40  ;;  %v705_v57 = vmul.f32 0.01, %v676_v46  ;;  %vm697_vm4 = vcmp.ge.f32.partialorder %v676_v46, 0.0  ;;  %v712_v3 = vsel %vm696_vm5, %v674_v51, %v704_v59 }
 0x299   : > { %v681_v32 = vpop.f32.mrf.mxu1 }
 0x29a   : > { %v682_v44 = vadd.f32 %v681_v32, %v583_v40  ;;  %v706_v55 = vmul.f32 0.01, %v680_v47  ;;  %vm698_vm3 = vcmp.ge.f32.partialorder %v680_v47, 0.0  ;;  %v713_v63 = vsel %vm697_vm4, %v676_v46, %v705_v57 }
 0x29b   : > { %v685_v34 = vpop.f32.mrf.mxu1  ;;  %v855_v40 = vmul.f32 %v1324_v24, %v1324_v24 }
 0x29c   : > { %v686_v41 = vadd.f32 %v685_v34, %v588_v35  ;;  %v707_v53 = vmul.f32 0.01, %v682_v44  ;;  %vm699_vm2 = vcmp.ge.f32.partialorder %v682_v44, 0.0  ;;  %v714_v62 = vsel %vm698_vm3, %v680_v47, %v706_v55 }
 0x29d   : > { %v687_v36 = vpop.f32.mrf.mxu1 }
 0x29e   : > { %v688_v38 = vadd.f32 %v687_v36, %v588_v35  ;;  %v708_v52 = vmul.f32 0.01, %v686_v41  ;;  %vm700_vm1 = vcmp.ge.f32.partialorder %v686_v41, 0.0  ;;  %v715_v61 = vsel %vm699_vm2, %v682_v44, %v707_v53 }
 0x29f   : > { %v691_v37 = vpop.f32.mrf.mxu1  ;;  %v856_v44 = vmul.f32 %v1322_v23, %v1322_v23 }
 0x2a0   : > { %v692_v39 = vadd.f32 %v691_v37, %v593_v33  ;;  %v709_v49 = vmul.f32 0.01, %v688_v38  ;;  %vm701_vm0 = vcmp.ge.f32.partialorder %v688_v38, 0.0  ;;  %v716_v60 = vsel %vm700_vm1, %v686_v41, %v708_v52 }
 0x2a1   : > { %v693_v42 = vpop.f32.mrf.mxu1 }
 0x2a2   : > { %v694_v45 = vadd.f32 %v693_v42, %v593_v33  ;;  %v710_v48 = vmul.f32 0.01, %v692_v39  ;;  %vm702_vm14 = vcmp.ge.f32.partialorder %v692_v39, 0.0  ;;  %v717_v58 = vsel %vm701_vm0, %v688_v38, %v709_v49 }
 0x2a3   : > { %v549_v33 = vrot.slane %v1314_v4, 4  ;;  %v544_v38 = vadd.f32 %v543_v28, %v1311_v1 }
 0x2a4   : > { %v711_v50 = vmul.f32 0.01, %v694_v45  ;;  %vm703_vm15 = vcmp.ge.f32.partialorder %v694_v45, 0.0  ;;  %v718_v56 = vsel %vm702_vm14, %v692_v39, %v710_v48 }
 0x2a5   : > { %v545_v48 = vrot.slane %v544_v38, 2 }
 0x2a6   : > { %v719_v54 = vsel %vm703_vm15, %v694_v45, %v711_v50 }
 0x2a7   : > { %766 = vmatprep.subr.mxu0 %v719_v54  ;;  %v546_v24 = vadd.f32 %v545_v48, %v544_v38 }
 0x2a8   : > { %767 = vmatpush1.msra.mxu0 %v718_v56 }
 0x2a9   : > { %768 = vmatprep.subr.mxu0 %v717_v58  ;;  %v547_v23 = vrot.slane %v546_v24, 1 }
 0x2aa   : > { %769 = vmatpush1.msra.mxu0 %v716_v60 }
 0x2ab   : > { %770 = vmatprep.subr.mxu0 %v715_v61 }
 0x2ac   : > { %771 = vmatpush1.msra.mxu0 %v714_v62 }
 0x2ad   : > { %772 = vmatprep.subr.mxu0 %v713_v63 }
 0x2ae   : > { %773 = vmatpush1.msra.mxu0 %v712_v3 }
 0x2af   : > { %1017 = vmatmul.mubr.msk.f32.vlgmr.msra.gmra.mxu0 %vm447_vm9, %v1013_v2  ;;  %v1143_v2 = vmov 1966171168  }
 0x2b0   : > { %812 = vmatprep.mubr.f32.mxu0 %v1141_v0  ;;  %v881_v3 = vunpack.c.l.s4 %v1143_v2 }
 0x2b3   : > { %1018 = vmatmul.mubr.msk.f32.gmra.mxu0 %vm447_vm9, %v1014_v5 }
 0x36f   : > { %v808_v9 = vpop.f32.mrf.mxu0 }
 0x370   : > { %v809_v10 = vadd.f32 %v808_v9, %v729_v7 }
 0x371   : > { %v810_v11 = vpop.f32.mrf.mxu0 }
 0x372   : > { %vm819_vm6 = vcmp.ge.f32.partialorder %v809_v10, 0.0  ;;  %v823_v12 = vmul.f32 0.01, %v809_v10  ;;  %v811_v13 = vadd.f32 %v810_v11, %v729_v7  ;;  %v548_v11 = vadd.f32 %v547_v23, %v546_v24 }
 0x373   : > { %v814_v18 = vpop.f32.mrf.mxu0 }
 0x374   : > { %v827_v14 = vsel %vm819_vm6, %v809_v10, %v823_v12  ;;  %vm820_vm7 = vcmp.ge.f32.partialorder %v811_v13, 0.0  ;;  %v824_v15 = vmul.f32 0.01, %v811_v13  ;;  %v815_v21 = vadd.f32 %v814_v18, %v734_v19 }
 0x375   : > { %v845_v16 = vmul.f32 1.442695, %v827_v14  ;;  %v816_v20 = vpop.f32.mrf.mxu0  ;;  %v831_v26 = vrot.slane %v827_v14, 4  ;;  %v883_v10 = vlaneseq }
 0x376   : > { %v828_v17 = vsel %vm820_vm7, %v811_v13, %v824_v15  ;;  %v817_v22 = vadd.f32 %v816_v20, %v734_v19  ;;  %v825_v25 = vmul.f32 0.01, %v815_v21  ;;  %vm821_vm8 = vcmp.ge.f32.partialorder %v815_v21, 0.0 }
 0x377   : > { %1075 = vpow2.f32 %v845_v16  ;;  %v847_v0 = vmul.f32 1.442695, %v828_v17  ;;  %v837_v30 = vrot.slane %v828_v17, 4  ;;  %v832_v35 = vadd.f32 %v831_v26, %v827_v14 }
 0x378   : > { %v826_v29 = vmul.f32 0.01, %v817_v22  ;;  %vm822_vm9 = vcmp.ge.f32.partialorder %v817_v22, 0.0  ;;  %v829_v34 = vsel %vm821_vm8, %v815_v21, %v825_v25  ;;  %v882_v16 = vunpack.c.0.s8 %v881_v3 }
 0x379   : > { %1077 = vpow2.f32 %v847_v0  ;;  %v838_v41 = vadd.f32 %v837_v30, %v828_v17  ;;  %v833_v45 = vrot.slane %v832_v35, 2  ;;  %v884_v19 = vshrl.u32 %v883_v10, 7 }
 0x37a   : > { %v830_v39 = vsel %vm822_vm9, %v817_v22, %v826_v29  ;;  %vm897_vm10 = vcmp.lt.s32.totalorder %v883_v10, 256 }
 0x37b   : > { %v839_v49 = vrot.slane %v838_v41, 2  ;;  %v834_v51 = vadd.f32 %v833_v45, %v832_v35  ;;  %v885_v26 = vsub.s32 %v882_v16, %v884_v19 }
 0x37d   : > { %v840_v54 = vadd.f32 %v839_v49, %v838_v41 }
 0x37f   : > { %v841_v60 = vrot.slane %v840_v54, 1 }
 0x381   : > { %v842_v12 = vadd.f32 %v841_v60, %v840_v54 }
 0x384   : > { %v1076_v27 = vpop.eup %1075 }
 0x385   : > { %v849_v31 = vmul.f32 %v1076_v27, %v1257_v8  ;;  %v550_v8 = vadd.f32 %v549_v33, %v1314_v4  ;;  %v835_v4 = vrot.slane %v834_v51, 1 }
 0x386   : > { %v1078_v32 = vpop.eup %1077 }
 0x387   : > { %v851_v36 = vadd.f32 %v849_v31, %v829_v34  ;;  %v850_v37 = vmul.f32 %v1078_v32, %v1251_v6  ;;  %v551_v1 = vrot.slane %v550_v8, 2  ;;  %v836_v5 = vadd.f32 %v835_v4, %v834_v51 }
 0x389   : > { %v853_v42 = vmul.f32 %v851_v36, %v851_v36  ;;  %v852_v43 = vadd.f32 %v850_v37, %v830_v39  ;;  %v552_v57 = vadd.f32 %v551_v1, %v550_v8  ;;  %v843_v17 = vadd.f32 %v836_v5, %v548_v11 }
 0x38b   : > { %v857_v46 = vadd.f32 %v855_v40, %v853_v42  ;;  %v854_v47 = vmul.f32 %v852_v43, %v852_v43  ;;  %v553_v63 = vrot.slane %v552_v57, 1 }
 0x38d   : > { %v859_v6 = vrot.slane %v857_v46, 4  ;;  %v858_v50 = vadd.f32 %v856_v44, %v854_v47  ;;  %v554_v15 = vadd.f32 %v553_v63, %v552_v57 }
 0x38f   : > { %v860_v52 = vadd.f32 %v859_v6, %v857_v46  ;;  %v865_v53 = vrot.slane %v858_v50, 4  ;;  %v844_v20 = vadd.f32 %v842_v12, %v554_v15 }
 0x391   : > { %v861_v55 = vrot.slane %v860_v52, 2  ;;  %v866_v56 = vadd.f32 %v865_v53, %v858_v50 }
 0x393   : > { %v862_v58 = vadd.f32 %v861_v55, %v860_v52  ;;  %v867_v59 = vrot.slane %v866_v56, 2 }
 0x395   : > { %v863_v61 = vrot.slane %v862_v58, 1  ;;  %v868_v62 = vadd.f32 %v867_v59, %v866_v56 }
 0x397   : > { %v864_v7 = vadd.f32 %v863_v61, %v862_v58  ;;  %v869_v9 = vrot.slane %v868_v62, 1 }
 0x399   : > { %v871_v13 = vmul.f32 -0.5, %v864_v7  ;;  %v870_v14 = vadd.f32 %v869_v9, %v868_v62 }
 0x39b   : > { %v1019_v0 = vadd.f32 -14.703016, %v871_v13  ;;  %v872_v18 = vmul.f32 -0.5, %v870_v14 }
 0x39d   : > { %v1020_v21 = vadd.f32 -14.703016, %v872_v18  ;;  %v875_v22 = vadd.f32 %v1019_v0, %v843_v17 }
 0x39f   : > { %v876_v25 = vadd.f32 %v1020_v21, %v844_v20 }
 0x3a1   : > { %v879_v27 = vcombine.low %v875_v22, %v876_v25 }
 0x3a3   : > { %v886_v28 = vrot.slane %v879_v27, %v885_v26 }
 0x3a5   : > { %v893_v29 = vrot.slane %v886_v28, %v885_v26 }
 0x3a7   : > { %899 = vst.msk [vmem:[%s261_s9] sm:$0x3] %vm897_vm10, %v893_v29 }
 0x3a8   : > { %1092 = shalt.err (!%p1089_p3)
}
 0x3a9   : > { %s1093_s26 = scalar_lea.hbm %s913_s15, 32  ;;  %s1097_s10 = scalar_lea.hbm %s1406_s6, 64 }
 0x3aa   : > { %p1094_p4 = scmp.ne.s32.totalorder %s913_s15, %s1093_s26  ;;  %p1098_p9 = scmp.lt.s32.totalorder %s913_s15, %s1406_s6 }
 0x3ab   : > { %p1099_p10 = scmp.lt.s32.totalorder %s1097_s10, %s1093_s26 }
 0x3ac   : > { %p1095_p7 = pnand %p1094_p4, %p1218_p5 }
 0x3ad   : > { %p1100_p11 = por %p1099_p10, %p1098_p9 }
 0x3ae   : > { %p1096_p8 = pneg %p1095_p7 }
 0x3b0   : > { %p1101_p12 = pnand %p1100_p11, %p1096_p8 }
 0x3b2   : > { %1104 = shalt.err (!%p1101_p12)
}
 0x3b3   : > { %1027 = dma.vmem_to_hbm [thread:$0]  (%p1218_p5), %s916_s18, 32, %s913_s15, %s901_s16  }
 0x3b4 PF: > { %p1033_p13 = scmp.ge.s32.totalorder %s1139_s24, 2  ;;  %s927_s9 = sand.u32 1, %s1127_s21  }
 0x3b5   : > { %s928_s13 = scalar_lea.sflag [#allocation3], %s927_s9 }
 0x3b6   : > { %p1030_p0 = pnand %p1033_p13, %p1222_p6 }
 0x3b8   : > { %p1031_p1 = pneg %p1030_p0 }
 0x3ba   : > { %1122 = dma.done.wait (%p1031_p1), %s928_s13, 32  }
 0x3bb   : > { %1124 = vsyncadd (%p1031_p1), %s928_s13, 4294967264  ;;  %p16_p2 = scmp.ge.s32.totalorder %s1205_s27, 4   ;;  %s1409_s21 = smov %s1131_s22 }
 0x3bc   : > { %s1410_s22 = smov %s1135_s23  ;;  %s1411_s23 = smov %s1216_s30 }
 0x3bd   : > { %s1412_s24 = smov %s1205_s27  ;;  %18 = sbr.rel (!%p16_p2) target bundleno = 3 (0x3), region = 86 }
 0x3c2   :  { %933 = vsyncpa [#allocation3], 1 }
 0x3c3   :  { %935 = vsyncpa [#allocation3 + $0x1], 1 }

</bundles_post_ra>
